<compile_context>
chip_gen: v5e
topology: v5e:2x2
jax: 0.10.0
libtpu: 0.0.40
codegen_flags: <defaults>
</compile_context>

<pallas_src>
import functools
import math

import jax
import jax.numpy as jnp
from jax.experimental import pallas as pl
from jax.experimental.pallas import tpu as pltpu

_LANES = 128
_SUBLANES = 8
_TILE_BYTES = 2 * 1024 * 1024  # per-input block byte budget (double-buffered x2 inputs)
_LOG2 = math.log(2.0)


def _log_cosh(x):
    # log(cosh(x)) = x + softplus(-2x) - log(2), numerically stable softplus.
    z = -2.0 * x
    sp = jnp.maximum(z, 0.0) + jnp.log1p(jnp.exp(-jnp.abs(z)))
    return x + sp - _LOG2
    # TODO(synk): on v6e/v7x with bf16 inputs the EUP could evaluate exp/log1p
    # in bf16 (~2x transcendental throughput); kept in f32 for accuracy.


def _log_cosh_partial_kernel(pred_ref, true_ref, out_ref, *,
                             block_rows, valid_rows, steps_per_core, inv_n,
                             ragged):
    c = pl.program_id(0)   # TensorCore ("parallel") axis
    j = pl.program_id(1)   # sequential reduction axis

    @pl.when(j == 0)
    def _init():
        out_ref[...] = jnp.zeros_like(out_ref)

    # Stream inputs in their native dtype; upcast in-register.
    x = pred_ref[...].astype(jnp.float32) - true_ref[...].astype(jnp.float32)

    def _accumulate(v):
        # (block_rows,128) -> (block_rows//8, 8, 128) matches the native
        # (8,128) vreg tile, so the axis-0 reduce lowers to pure VPU adds
        # into the resident (1,8,128) output/accumulator block.
        out_ref[...] += _log_cosh(v).reshape(
            block_rows // _SUBLANES, _SUBLANES, _LANES).sum(axis=0)[None]

    if not ragged:
        # Static: grid exactly tiles the array -> no masking anywhere.
        _accumulate(x)
    else:
        # Only the last real block (and phantom blocks on an under-full core)
        # pay for the iota + compare + select; every other step is unmasked.
        row_start = (c * steps_per_core + j) * block_rows
        is_partial = row_start + block_rows > valid_rows

        @pl.when(jnp.logical_not(is_partial))
        def _full():
            _accumulate(x)

        @pl.when(is_partial)
        def _masked():
            row_ids = row_start + jax.lax.broadcasted_iota(
                jnp.int32, (block_rows, _LANES), 0)
            # Mask x (not the result): garbage rows never reach exp/log1p and
            # log-cosh(0) == 0 drops them from the sum.
            _accumulate(jnp.where(row_ids < valid_rows, x, 0.0))

    @pl.when(j == pl.num_programs(1) - 1)
    def _finish():
        out_ref[...] = out_ref[...] * inv_n   # fold 1/N of the mean in-kernel


def _num_tensorcores() -> int:
    """TensorCores a 'parallel' grid axis can shard across (v7x/megacore: 2)."""
    try:
        kind = jax.devices()[0].device_kind.lower()
    except Exception:
        return 1
    return 2 if any(t in kind for t in ("v7", "tpu7", "v4", "v5p")) else 1


def _row_align(dtype) -> int:
    # Packed sub-32-bit dtypes need more sublanes per native tile.
    return max(_SUBLANES, 32 // jnp.dtype(dtype).itemsize)


def log_cosh_loss_pallas(y_pred: jax.Array, y_true: jax.Array) -> jax.Array:
    assert y_pred.shape == y_true.shape, "shapes must match (no broadcasting)"
    n_elem = y_pred.size
    assert n_elem > 0

    pred_flat = y_pred.reshape(-1)
    true_flat = y_true.reshape(-1)

    # Pad ONLY when the element count is not lane-aligned (the in-kernel mask
    # is row-granular).  jnp.pad materializes a full copy, so sublane / grid
    # raggedness is handled by masking inside the kernel instead.
    rem = n_elem % _LANES
    if rem:
        pad = _LANES - rem                      # zero pad -> log-cosh(0) == 0
        pred_flat = jnp.pad(pred_flat, (0, pad))
        true_flat = jnp.pad(true_flat, (0, pad))

    rows = pred_flat.size // _LANES
    pred2d = pred_flat.reshape(rows, _LANES)
    true2d = true_flat.reshape(rows, _LANES)

    itemsize = max(jnp.dtype(y_pred.dtype).itemsize,
                   jnp.dtype(y_true.dtype).itemsize)
    row_align = max(_row_align(y_pred.dtype), _row_align(y_true.dtype))
    budget_rows = _TILE_BYTES // (_LANES * itemsize)
    budget_rows = max(row_align, (budget_rows // row_align) * row_align)
    rows_up = pl.cdiv(rows, row_align) * row_align
    block_rows = min(budget_rows, rows_up)

    total_blocks = pl.cdiv(rows, block_rows)
    num_cores = min(_num_tensorcores(), total_blocks)
    steps_per_core = pl.cdiv(total_blocks, num_cores)
    # Ragged iff the last real block overhangs the array or a core gets a
    # phantom (clamped, fully-masked) block.
    ragged = (rows % block_rows != 0) or (num_cores * steps_per_core != total_blocks)

    def block_index(c, j):
        lb = c * steps_per_core + j
        # Clamp phantom blocks onto the last real block: DMA stays in bounds,
        # the kernel masks their contribution to zero.
        return (jnp.minimum(lb, total_blocks - 1), 0)

    kernel = functools.partial(
        _log_cosh_partial_kernel,
        block_rows=block_rows,
        valid_rows=rows,
        steps_per_core=steps_per_core,
        inv_n=1.0 / float(n_elem),
        ragged=ragged,
    )

    in_bytes = n_elem * (jnp.dtype(y_pred.dtype).itemsize
                         + jnp.dtype(y_true.dtype).itemsize)
    cost = pl.CostEstimate(flops=10 * n_elem,
                           transcendentals=2 * n_elem,
                           bytes_accessed=in_bytes + num_cores * _SUBLANES * _LANES * 4)

    partials = pl.pallas_call(
        kernel,
        out_shape=jax.ShapeDtypeStruct((num_cores, _SUBLANES, _LANES), jnp.float32),
        grid_spec=pltpu.PrefetchScalarGridSpec(
            num_scalar_prefetch=0,
            grid=(num_cores, steps_per_core),
            in_specs=[
                pl.BlockSpec((block_rows, _LANES), block_index),
                pl.BlockSpec((block_rows, _LANES), block_index),
            ],
            out_specs=pl.BlockSpec((1, _SUBLANES, _LANES), lambda c, j: (c, 0, 0)),
        ),
        compiler_params=pltpu.CompilerParams(
            dimension_semantics=("parallel", "arbitrary"),
            vmem_limit_bytes=40 << 20,  # headroom for 2 inputs x 2 bufs x 2 MiB + temps
        ),
        cost_estimate=cost,
    )(pred2d, true2d)

    # Per-core partial sums already carry the 1/N factor; one tiny XLA reduce.
    return jnp.sum(partials)


def _reference(y_pred, y_true):
    x = y_pred.astype(jnp.float32) - y_true.astype(jnp.float32)
    return jnp.mean(x + jax.nn.softplus(-2.0 * x) - math.log(2.0))


if __name__ == "__main__":
    key = jax.random.PRNGKey(0)
    k1, k2 = jax.random.split(key)

    # Primary check: small NCHW-shaped regression tensors (clean, single block).
    shape = (2, 4, 16, 16)
    y_pred = jax.random.normal(k1, shape, dtype=jnp.float32)
    y_true = jax.random.normal(k2, shape, dtype=jnp.float32)
    loss = jax.block_until_ready(log_cosh_loss_pallas(y_pred, y_true))
    ref = jax.block_until_ready(_reference(y_pred, y_true))
    assert jnp.allclose(loss, ref, atol=1e-5, rtol=1e-5), (loss, ref)

    # bf16 + odd size: exercises the minimal lane pad and the masked ragged block.
    k3, k4 = jax.random.split(k2)
    shape2 = (3, 300, 301)
    p2 = jax.random.normal(k3, shape2, dtype=jnp.bfloat16)
    t2 = jax.random.normal(k4, shape2, dtype=jnp.bfloat16)
    loss2 = jax.block_until_ready(log_cosh_loss_pallas(p2, t2))
    ref2 = jax.block_until_ready(_reference(p2, t2))
    assert jnp.allclose(loss2, ref2, atol=1e-3, rtol=1e-3), (loss2, ref2)

    # Multi-block f32 with a ragged last block: exercises the parallel axis,
    # the unmasked fast path, and the masked final/phantom block.
    k5, k6 = jax.random.split(k4)
    shape3 = (5, 999, 128)
    p3 = jax.random.normal(k5, shape3, dtype=jnp.float32)
    t3 = jax.random.normal(k6, shape3, dtype=jnp.float32)
    loss3 = jax.block_until_ready(log_cosh_loss_pallas(p3, t3))
    ref3 = jax.block_until_ready(_reference(p3, t3))
    assert jnp.allclose(loss3, ref3, atol=1e-5, rtol=1e-5), (loss3, ref3)

    print("KERNEL_OK")
</pallas_src>

<mosaic_0001>
module attributes {stable_mosaic.version = 11 : i64} {
  func.func @_log_cosh_partial_kernel(%arg0: i32, %arg1: i32, %arg2: memref<16x128xf32, #tpu.memory_space<vmem>>, %arg3: memref<16x128xf32, #tpu.memory_space<vmem>>, %arg4: memref<1x8x128xf32, #tpu.memory_space<vmem>>) attributes {dimension_semantics = [#tpu.dimension_semantics<parallel>, #tpu.dimension_semantics<arbitrary>], iteration_bounds = array<i64: 1, 1>, scalar_prefetch = 0 : i64, scratch_operands = 0 : i64, tpu.core_type = #tpu.core_type<tc>, window_params = [{transform_indices = @transform_0, window_bounds = array<i64: 16, 128>}, {transform_indices = @transform_1, window_bounds = array<i64: 16, 128>}, {transform_indices = @transform_2, window_bounds = array<i64: 1, 8, 128>}]} {
    %c0_i32 = arith.constant 0 : i32
    %0 = arith.cmpi eq, %arg1, %c0_i32 : i32
    %1 = arith.extui %0 : i1 to i32
    %c0_i32_0 = arith.constant 0 : i32
    %2 = arith.cmpi ne, %1, %c0_i32_0 : i32
    scf.if %2 {
      %cst_16 = arith.constant 0.000000e+00 : f32
      %28 = vector.broadcast %cst_16 : f32 to vector<1x8x128xf32>
      %c0_17 = arith.constant 0 : index
      %c0_18 = arith.constant 0 : index
      %c0_19 = arith.constant 0 : index
      %29 = vector.load %arg4[%c0_17, %c0_18, %c0_19] : memref<1x8x128xf32, #tpu.memory_space<vmem>>, vector<1x8x128xf32>
      tpu.vector_store %arg4[%c0_17, %c0_18, %c0_19], %28 {strides = array<i32>} : memref<1x8x128xf32, #tpu.memory_space<vmem>>, vector<1x8x128xf32>,
    } else {
    }
    %c0 = arith.constant 0 : index
    %c0_1 = arith.constant 0 : index
    %3 = vector.load %arg2[%c0, %c0_1] : memref<16x128xf32, #tpu.memory_space<vmem>>, vector<16x128xf32>
    %c0_2 = arith.constant 0 : index
    %c0_3 = arith.constant 0 : index
    %4 = vector.load %arg3[%c0_2, %c0_3] : memref<16x128xf32, #tpu.memory_space<vmem>>, vector<16x128xf32>
    %5 = arith.subf %3, %4 : vector<16x128xf32>
    %c0_4 = arith.constant 0 : index
    %c0_5 = arith.constant 0 : index
    %c0_6 = arith.constant 0 : index
    %6 = vector.load %arg4[%c0_4, %c0_5, %c0_6] : memref<1x8x128xf32, #tpu.memory_space<vmem>>, vector<1x8x128xf32>
    %cst = arith.constant -2.000000e+00 : f32
    %7 = vector.broadcast %cst : f32 to vector<16x128xf32>
    %8 = arith.mulf %7, %5 : vector<16x128xf32>
    %cst_7 = arith.constant 0.000000e+00 : f32
    %9 = vector.broadcast %cst_7 : f32 to vector<16x128xf32>
    %10 = arith.maximumf %8, %9 : vector<16x128xf32>
    %11 = math.absf %8 : vector<16x128xf32>
    %cst_8 = arith.constant 0.000000e+00 : f32
    %12 = vector.broadcast %cst_8 : f32 to vector<16x128xf32>
    %13 = arith.subf %12, %11 : vector<16x128xf32>
    %14 = math.exp %13 : vector<16x128xf32>
    %15 = math.log1p %14 : vector<16x128xf32>
    %16 = arith.addf %10, %15 : vector<16x128xf32>
    %17 = arith.addf %5, %16 : vector<16x128xf32>
    %cst_9 = arith.constant 0.693147182 : f32
    %18 = vector.broadcast %cst_9 : f32 to vector<16x128xf32>
    %19 = arith.subf %17, %18 : vector<16x128xf32>
    %20 = vector.shape_cast %19 : vector<16x128xf32> to vector<2x8x128xf32>
    %cst_10 = arith.constant dense<0.000000e+00> : vector<8x128xf32>
    %21 = vector.multi_reduction <add>, %20, %cst_10 [0] : vector<2x8x128xf32> to vector<8x128xf32>
    %22 = vector.shape_cast %21 : vector<8x128xf32> to vector<1x8x128xf32>
    %23 = arith.addf %6, %22 : vector<1x8x128xf32>
    %c0_11 = arith.constant 0 : index
    %c0_12 = arith.constant 0 : index
    %c0_13 = arith.constant 0 : index
    %24 = vector.load %arg4[%c0_11, %c0_12, %c0_13] : memref<1x8x128xf32, #tpu.memory_space<vmem>>, vector<1x8x128xf32>
    tpu.vector_store %arg4[%c0_11, %c0_12, %c0_13], %23 {strides = array<i32>} : memref<1x8x128xf32, #tpu.memory_space<vmem>>, vector<1x8x128xf32>,
    %c0_i32_14 = arith.constant 0 : i32
    %25 = arith.cmpi eq, %arg1, %c0_i32_14 : i32
    %26 = arith.extui %25 : i1 to i32
    %c0_i32_15 = arith.constant 0 : i32
    %27 = arith.cmpi ne, %26, %c0_i32_15 : i32
    scf.if %27 {
      %c0_16 = arith.constant 0 : index
      %c0_17 = arith.constant 0 : index
      %c0_18 = arith.constant 0 : index
      %28 = vector.load %arg4[%c0_16, %c0_17, %c0_18] : memref<1x8x128xf32, #tpu.memory_space<vmem>>, vector<1x8x128xf32>
      %cst_19 = arith.constant 4.8828125E-4 : f32
      %29 = vector.broadcast %cst_19 : f32 to vector<1x8x128xf32>
      %30 = arith.mulf %28, %29 : vector<1x8x128xf32>
      %c0_20 = arith.constant 0 : index
      %c0_21 = arith.constant 0 : index
      %c0_22 = arith.constant 0 : index
      %31 = vector.load %arg4[%c0_20, %c0_21, %c0_22] : memref<1x8x128xf32, #tpu.memory_space<vmem>>, vector<1x8x128xf32>
      tpu.vector_store %arg4[%c0_20, %c0_21, %c0_22], %30 {strides = array<i32>} : memref<1x8x128xf32, #tpu.memory_space<vmem>>, vector<1x8x128xf32>,
    } else {
    }
    return
  }
  func.func @transform_0(%arg0: i32, %arg1: i32) -> (i32, i32) {
    %c1_i32 = arith.constant 1 : i32
    %0 = arith.muli %arg0, %c1_i32 : i32
    %1 = arith.addi %0, %arg1 : i32
    %c0_i32 = arith.constant 0 : i32
    %2 = arith.minsi %1, %c0_i32 : i32
    %c0_i32_0 = arith.constant 0 : i32
    %c0_i32_1 = arith.constant 0 : i32
    return %2, %c0_i32_0 : i32, i32
  }
  func.func @transform_1(%arg0: i32, %arg1: i32) -> (i32, i32) {
    %c1_i32 = arith.constant 1 : i32
    %0 = arith.muli %arg0, %c1_i32 : i32
    %1 = arith.addi %0, %arg1 : i32
    %c0_i32 = arith.constant 0 : i32
    %2 = arith.minsi %1, %c0_i32 : i32
    %c0_i32_0 = arith.constant 0 : i32
    %c0_i32_1 = arith.constant 0 : i32
    return %2, %c0_i32_0 : i32, i32
  }
  func.func @transform_2(%arg0: i32, %arg1: i32) -> (i32, i32, i32) {
    %c0_i32 = arith.constant 0 : i32
    %c0_i32_0 = arith.constant 0 : i32
    %c0_i32_1 = arith.constant 0 : i32
    return %arg0, %c0_i32, %c0_i32_0 : i32, i32, i32
  }
}

</mosaic_0001>

<bundles_post_ra>
// kernel: tpu_custom_call.1
= control target key start
LH: loop header
LB: loop body
LE: loop exit
PB: predicated region body
PF: predicated region fallthrough
CT: control target
= control target key end

     0   :  { %7 = vsyncpa [#allocation3], 0  ;;  %s266_s0 = inlined_call_operand.hbm [shape: f32[16,128], index: 0, kind: input, shape index: {}]   ;;  %s267_s1 = inlined_call_operand.hbm [shape: f32[16,128], index: 1, kind: input, shape index: {}]   ;;  %s268_s2 = inlined_call_operand.hbm [shape: f32[1,8,128], index: 2, kind: output, shape index: {}]  }
   0x1   :  { %8 = vsyncpa [#allocation6], 0 }
   0x2   :  { %9 = vsyncpa [#allocation4], 0  ;;  %s20_s11 = sshll.u32 %s266_s0, 4  ;;  %s237_s12 = smov [#allocation2]   ;;  %s21_s11 = int_to_ptr.hbm [resolvable:$true] %s20_s11 }
   0x3   :  { %s22_s13 = sshll.u32 %s237_s12, 4  ;;  %s39_s16 = sshll.u32 %s267_s1, 4  ;;  %s23_s13 = int_to_ptr.vmem [resolvable:$true] %s22_s13  ;;  %s40_s16 = int_to_ptr.hbm [resolvable:$true] %s39_s16 }
   0x4   :  { %s238_s17 = smov 128   ;;  %s239_s18 = smov 8  }
   0x5   :  { %28 = dma.hbm_to_vmem [thread:$0]  %s21_s11, 256, %s23_s13, [#allocation3], %s238_s17, %s238_s17, %s239_s18  }
   0x6   :  { %s240_s19 = smov [#allocation5]  }
   0x7   :  { %s41_s20 = sshll.u32 %s240_s19, 4  ;;  %s42_s20 = int_to_ptr.vmem [resolvable:$true] %s41_s20 }
   0x8   :  { %47 = dma.hbm_to_vmem [thread:$0]  %s40_s16, 256, %s42_s20, [#allocation6], %s238_s17, %s238_s17, %s239_s18  }
   0x9   :  { %231 = dma.done.wait [#allocation3], 256  }
   0xa   :  { %232 = vsyncadd [#allocation3], 4294967040 }
   0xb   :  { %233 = dma.done.wait [#allocation6], 256  }
   0xc   :  { %234 = vsyncadd [#allocation6], 4294967040  ;;  %v69_v0 = vld [vmem:[#allocation2] sm:$0xff]  ;;  %v70_v1 = vld [vmem:[#allocation2 + $0x8] sm:$0xff]  ;;  %s241_s0 = smov [#allocation7]   ;;  %s128_s23 = sshll.u32 %s268_s2, 4  ;;  %s129_s23 = int_to_ptr.hbm [resolvable:$true] %s128_s23 }
   0xd   :  { %v71_v2 = vld [vmem:[#allocation5] sm:$0xff]  ;;  %v72_v3 = vld [vmem:[#allocation5 + $0x8] sm:$0xff]  ;;  %s126_s1 = sshll.u32 %s241_s0, 4  ;;  %s127_s1 = int_to_ptr.vmem [resolvable:$true] %s126_s1 }
   0xe   :  { %v73_v4 = vsub.f32 %v69_v0, %v71_v2  ;;  %v74_v5 = vsub.f32 %v70_v1, %v72_v3 }
  0x10   :  { %v76_v6 = vmul.f32 -2.0, %v73_v4  ;;  %v77_v7 = vmul.f32 -2.0, %v74_v5 }
  0x12   :  { %v80_v8 = vand.u32 2147483647, %v76_v6  ;;  %v81_v9 = vand.u32 2147483647, %v77_v7  ;;  %v78_v26 = vmax.f32 %v76_v6, 0.0  ;;  %v79_v29 = vmax.f32 %v77_v7, 0.0 }
  0x14   :  { %v82_v10 = vsub.f32 0.0, %v80_v8  ;;  %v83_v11 = vsub.f32 0.0, %v81_v9 }
  0x16   :  { %v84_v12 = vmul.f32 1.442695, %v82_v10  ;;  %v86_v13 = vmul.f32 1.442695, %v83_v11 }
  0x18   :  { %151 = vpow2.f32 %v84_v12 }
  0x19   :  { %153 = vpow2.f32 %v86_v13 }
  0x1e   :  { %v152_v14 = vpop.eup %151 }
  0x1f   :  { %v154_v15 = vpop.eup %153  ;;  %v88_v16 = vadd.f32 1.0, %v152_v14  ;;  %v91_v17 = vmul.f32 -0.5, %v152_v14  ;;  %v94_v21 = vand.u32 2147483647, %v152_v14 }
  0x20   :  { %v97_v18 = vadd.f32 1.0, %v154_v15  ;;  %v100_v19 = vmul.f32 -0.5, %v154_v15  ;;  %v103_v23 = vand.u32 2147483647, %v154_v15 }
  0x21   :  { %155 = vlog2.f32 %v88_v16  ;;  %v92_v20 = vadd.f32 1.0, %v91_v17  ;;  %vm95_vm0 = vcmp.lt.f32.partialorder %v94_v21, 0.0004427343 }
  0x22   :  { %157 = vlog2.f32 %v97_v18  ;;  %v101_v22 = vadd.f32 1.0, %v100_v19  ;;  %vm104_vm1 = vcmp.lt.f32.partialorder %v103_v23, 0.0004427343 }
  0x23   :  { %v93_v24 = vmul.f32 %v152_v14, %v92_v20 }
  0x24   :  { %v102_v27 = vmul.f32 %v154_v15, %v101_v22 }
  0x27   :  { %v156_v25 = vpop.eup %155 }
  0x28   :  { %v158_v28 = vpop.eup %157  ;;  %v90_v30 = vmul.f32 0.6931472, %v156_v25 }
  0x29   :  { %v99_v31 = vmul.f32 0.6931472, %v158_v28 }
  0x2a   :  { %v96_v32 = vsel %vm95_vm0, %v93_v24, %v90_v30 }
  0x2b   :  { %v105_v33 = vsel %vm104_vm1, %v102_v27, %v99_v31  ;;  %v106_v34 = vadd.f32 %v96_v32, %v78_v26 }
  0x2c   :  { %v107_v35 = vadd.f32 %v105_v33, %v79_v29 }
  0x2d   :  { %v108_v36 = vadd.f32 %v106_v34, %v73_v4 }
  0x2e   :  { %v109_v37 = vadd.f32 %v107_v35, %v74_v5 }
  0x2f   :  { %v143_v38 = vadd.f32 -0.6931472, %v108_v36 }
  0x30   :  { %v144_v39 = vadd.f32 -0.6931472, %v109_v37 }
  0x32   :  { %v112_v40 = vadd.f32 %v144_v39, %v143_v38 }
  0x34   :  { %v119_v41 = vmul.f32 0.00048828125, %v112_v40 }
  0x36   :  { %120 = vst [vmem:[#allocation7] sm:$0xff] %v119_v41 }
  0x37   :  { %131 = dma.vmem_to_hbm [thread:$0]  %s127_s1, 128, %s129_s23, [#allocation4]  }
  0x38   :  { %235 = dma.done.wait [#allocation4], 128  }
  0x39   :  { %236 = vsyncadd [#allocation4], 4294967168 }
  0x3a   :  { %136 = vsyncpa [#allocation3], 1 }
  0x3b   :  { %137 = vsyncpa [#allocation6], 1 }
  0x3c   :  { %138 = vsyncpa [#allocation4], 1 }

</bundles_post_ra>
